<compile_context>
chip_gen: v7x
topology: tpu7x:2x2x1
jax: 0.10.0
libtpu: 0.0.40
codegen_flags: <defaults>
</compile_context>

<pallas_src>
import functools
import math

import jax
import jax.numpy as jnp
from jax.experimental import pallas as pl
from jax.experimental.pallas import tpu as pltpu

_LANES = 128


def _bce_logits_kernel(x_ref, y_ref, o_ref, acc_ref, *,
                       tile_rows, blocks_per_core, full_blocks,
                       valid_rows, needs_mask):
    c = pl.program_id(0)            # core / partial-sum axis ("parallel")
    k = pl.program_id(1)            # reduction axis within a core ("arbitrary")
    blk = c * blocks_per_core + k   # global (unclamped) row-block index

    @pl.when(k == 0)
    def _init():
        acc_ref[...] = jnp.zeros_like(acc_ref)

    # Cast in-kernel (wrapper never materializes f32 copies).
    x = x_ref[...].astype(jnp.float32)
    y = y_ref[...].astype(jnp.float32)
    # Numerically-stable BCE with logits: max(x,0) - x*y + log1p(exp(-|x|))
    elem = jnp.maximum(x, 0.0) - x * y + jnp.log1p(jnp.exp(-jnp.abs(x)))

    def _fold(e):
        # Keep per-step accumulation on the VPU: add (8,128) chunks together.
        # The single cross-lane reduce happens once, outside the kernel.
        if tile_rows % 8 == 0:
            return e.reshape(tile_rows // 8, 8, _LANES).sum(axis=0)
        return e.sum(axis=0, keepdims=True)          # tiny-input fallback

    if needs_mask:
        # Only tail blocks can contain out-of-range rows; keep the mask cost
        # (iota/compare/select) off the fully-valid hot blocks.
        @pl.when(blk < full_blocks)
        def _hot():
            acc_ref[...] += _fold(elem)

        @pl.when(blk >= full_blocks)
        def _tail():
            row = (jax.lax.broadcasted_iota(jnp.int32, elem.shape, 0)
                   + blk * tile_rows)
            acc_ref[...] += _fold(jnp.where(row < valid_rows, elem, 0.0))
    else:
        acc_ref[...] += _fold(elem)

    @pl.when(k == blocks_per_core - 1)
    def _finalize():
        o_ref[...] = acc_ref[...][None]


def binary_class_criterion(preds, labels, loss_type="BCE"):
    """Pallas TPU implementation of BinaryClassCriterion.forward (BCE path)."""
    if loss_type != "BCE":
        # TODO(synk): Focal/Lovasz/Dice/MixedDiceBCE branches not implemented
        # (Lovasz needs a global descending sort: no clean Pallas equivalent).
        raise NotImplementedError(loss_type)

    n = int(preds.size)
    xf = preds.reshape(-1)            # free row-major reshape, no copy/cast
    yf = labels.reshape(-1)

    pad_lanes = (-n) % _LANES
    if pad_lanes:
        # TODO(synk): lane remainder forces a padded copy; typical segmentation
        # shapes (numel % 128 == 0) never take this path.  Padded zeros each
        # contribute exactly ln(2); corrected analytically below.
        xf = jnp.pad(xf, (0, pad_lanes))
        yf = jnp.pad(yf, (0, pad_lanes))
    rows = (n + pad_lanes) // _LANES
    x2 = xf.reshape(rows, _LANES)     # lane-dense slab
    y2 = yf.reshape(rows, _LANES)

    # Row tiling: <=2 MiB/input/tile (f32); tile rows a multiple of 32 (safe
    # for f32/bf16/int8 sublane packing) or the full row count for tiny inputs.
    if rows < 32:
        tile_rows = rows
    else:
        tile_rows = -(-rows // 4)                 # aim for ~4 blocks total
        tile_rows = -(-tile_rows // 32) * 32
        tile_rows = min(tile_rows, 4096)

    total_blocks = -(-rows // tile_rows)
    blocks_per_core = -(-total_blocks // 2)       # 2-way split (v7x megacore)
    padded_blocks = 2 * blocks_per_core
    full_blocks = rows // tile_rows               # blocks with no invalid rows
    needs_mask = (rows % tile_rows != 0) or (padded_blocks > total_blocks)
    acc_rows = 8 if tile_rows % 8 == 0 else 1

    if padded_blocks > total_blocks:
        # Clamp duplicate tail iterations onto the last valid block; the
        # kernel masks their contribution to zero.
        def row_index(c, k, _bpc=blocks_per_core, _last=total_blocks - 1):
            return (jnp.minimum(c * _bpc + k, _last), 0)
    else:
        def row_index(c, k, _bpc=blocks_per_core):
            return (c * _bpc + k, 0)

    kernel = functools.partial(
        _bce_logits_kernel,
        tile_rows=tile_rows,
        blocks_per_core=blocks_per_core,
        full_blocks=full_blocks,
        valid_rows=rows,
        needs_mask=needs_mask)

    partials = pl.pallas_call(
        kernel,
        out_shape=jax.ShapeDtypeStruct((2, acc_rows, _LANES), jnp.float32),
        grid_spec=pltpu.PrefetchScalarGridSpec(
            num_scalar_prefetch=0,
            grid=(2, blocks_per_core),
            in_specs=[
                pl.BlockSpec((tile_rows, _LANES), row_index),
                pl.BlockSpec((tile_rows, _LANES), row_index),
            ],
            out_specs=pl.BlockSpec((1, acc_rows, _LANES),
                                   lambda c, k: (c, 0, 0)),
            scratch_shapes=[pltpu.VMEM((acc_rows, _LANES), jnp.float32)],
        ),
        compiler_params=pltpu.CompilerParams(
            dimension_semantics=("parallel", "arbitrary")),
    )(x2, y2)

    total = jnp.sum(partials)                         # tiny XLA reduce
    if pad_lanes:
        total = total - jnp.float32(pad_lanes * math.log(2.0))
    return total / jnp.float32(n)


def bce_with_logits_ref(x, y):
    """Pure-JAX reference mirroring torch.nn.BCEWithLogitsLoss (mean)."""
    x = x.astype(jnp.float32)
    y = y.astype(jnp.float32)
    return jnp.mean(jnp.maximum(x, 0.0) - x * y + jnp.log1p(jnp.exp(-jnp.abs(x))))


if __name__ == "__main__":
    key = jax.random.PRNGKey(0)
    k_p, k_l = jax.random.split(key)
    B, C, H, W = 2, 4, 16, 16
    preds = jax.random.normal(k_p, (B, C, H, W), dtype=jnp.float32)
    labels = jax.random.bernoulli(k_l, 0.5, (B, C, H, W)).astype(jnp.float32)

    loss = jax.block_until_ready(binary_class_criterion(preds, labels))
    ref = bce_with_logits_ref(preds, labels)

    assert loss.shape == ()
    assert jnp.allclose(loss, ref, atol=1e-5, rtol=1e-5), (float(loss), float(ref))
    print("KERNEL_OK")
</pallas_src>

<mosaic_0001>
module attributes {stable_mosaic.version = 11 : i64} {
  func.func @_bce_logits_kernel(%arg0: i32, %arg1: i32, %arg2: memref<16x128xf32, #tpu.memory_space<vmem>>, %arg3: memref<16x128xf32, #tpu.memory_space<vmem>>, %arg4: memref<1x8x128xf32, #tpu.memory_space<vmem>>, %arg5: memref<8x128xf32, #tpu.memory_space<vmem>>) attributes {dimension_semantics = [#tpu.dimension_semantics<parallel>, #tpu.dimension_semantics<arbitrary>], iteration_bounds = array<i64: 2, 1>, scalar_prefetch = 0 : i64, scratch_operands = 1 : i64, tpu.core_type = #tpu.core_type<tc>, window_params = [{transform_indices = @transform_0, window_bounds = array<i64: 16, 128>}, {transform_indices = @transform_1, window_bounds = array<i64: 16, 128>}, {transform_indices = @transform_2, window_bounds = array<i64: 1, 8, 128>}]} {
    %c1_i32 = arith.constant 1 : i32
    %0 = arith.muli %arg0, %c1_i32 : i32
    %1 = arith.addi %0, %arg1 : i32
    %c0_i32 = arith.constant 0 : i32
    %2 = arith.cmpi eq, %arg1, %c0_i32 : i32
    %3 = arith.extui %2 : i1 to i32
    %c0_i32_0 = arith.constant 0 : i32
    %4 = arith.cmpi ne, %3, %c0_i32_0 : i32
    scf.if %4 {
      %cst_11 = arith.constant 0.000000e+00 : f32
      %26 = vector.broadcast %cst_11 : f32 to vector<8x128xf32>
      %c0_12 = arith.constant 0 : index
      %c0_13 = arith.constant 0 : index
      %27 = vector.load %arg5[%c0_12, %c0_13] : memref<8x128xf32, #tpu.memory_space<vmem>>, vector<8x128xf32>
      tpu.vector_store %arg5[%c0_12, %c0_13], %26 {strides = array<i32>} : memref<8x128xf32, #tpu.memory_space<vmem>>, vector<8x128xf32>,
    } else {
    }
    %c0 = arith.constant 0 : index
    %c0_1 = arith.constant 0 : index
    %5 = vector.load %arg2[%c0, %c0_1] : memref<16x128xf32, #tpu.memory_space<vmem>>, vector<16x128xf32>
    %c0_2 = arith.constant 0 : index
    %c0_3 = arith.constant 0 : index
    %6 = vector.load %arg3[%c0_2, %c0_3] : memref<16x128xf32, #tpu.memory_space<vmem>>, vector<16x128xf32>
    %cst = arith.constant 0.000000e+00 : f32
    %7 = vector.broadcast %cst : f32 to vector<16x128xf32>
    %8 = arith.maximumf %5, %7 : vector<16x128xf32>
    %9 = arith.mulf %5, %6 : vector<16x128xf32>
    %10 = arith.subf %8, %9 : vector<16x128xf32>
    %11 = math.absf %5 : vector<16x128xf32>
    %cst_4 = arith.constant 0.000000e+00 : f32
    %12 = vector.broadcast %cst_4 : f32 to vector<16x128xf32>
    %13 = arith.subf %12, %11 : vector<16x128xf32>
    %14 = math.exp %13 : vector<16x128xf32>
    %15 = math.log1p %14 : vector<16x128xf32>
    %16 = arith.addf %10, %15 : vector<16x128xf32>
    %c1_i32_5 = arith.constant 1 : i32
    %17 = arith.cmpi slt, %1, %c1_i32_5 : i32
    %18 = arith.extui %17 : i1 to i32
    %c0_i32_6 = arith.constant 0 : i32
    %19 = arith.cmpi ne, %18, %c0_i32_6 : i32
    scf.if %19 {
      %c0_11 = arith.constant 0 : index
      %c0_12 = arith.constant 0 : index
      %26 = vector.load %arg5[%c0_11, %c0_12] : memref<8x128xf32, #tpu.memory_space<vmem>>, vector<8x128xf32>
      %27 = vector.shape_cast %16 : vector<16x128xf32> to vector<2x8x128xf32>
      %cst_13 = arith.constant dense<0.000000e+00> : vector<8x128xf32>
      %28 = vector.multi_reduction <add>, %27, %cst_13 [0] : vector<2x8x128xf32> to vector<8x128xf32>
      %29 = arith.addf %26, %28 : vector<8x128xf32>
      %c0_14 = arith.constant 0 : index
      %c0_15 = arith.constant 0 : index
      %30 = vector.load %arg5[%c0_14, %c0_15] : memref<8x128xf32, #tpu.memory_space<vmem>>, vector<8x128xf32>
      tpu.vector_store %arg5[%c0_14, %c0_15], %29 {strides = array<i32>} : memref<8x128xf32, #tpu.memory_space<vmem>>, vector<8x128xf32>,
    } else {
    }
    %c1_i32_7 = arith.constant 1 : i32
    %20 = arith.cmpi sge, %1, %c1_i32_7 : i32
    %21 = arith.extui %20 : i1 to i32
    %c0_i32_8 = arith.constant 0 : i32
    %22 = arith.cmpi ne, %21, %c0_i32_8 : i32
    scf.if %22 {
      %26 = tpu.iota {dimensions = array<i32: 0>} : vector<16x128xi32>
      %c16_i32 = arith.constant 16 : i32
      %27 = arith.muli %1, %c16_i32 : i32
      %28 = vector.broadcast %27 : i32 to vector<16x128xi32>
      %29 = arith.addi %26, %28 : vector<16x128xi32>
      %c0_11 = arith.constant 0 : index
      %c0_12 = arith.constant 0 : index
      %30 = vector.load %arg5[%c0_11, %c0_12] : memref<8x128xf32, #tpu.memory_space<vmem>>, vector<8x128xf32>
      %c16_i32_13 = arith.constant 16 : i32
      %31 = vector.broadcast %c16_i32_13 : i32 to vector<16x128xi32>
      %32 = arith.cmpi slt, %29, %31 : vector<16x128xi32>
      %cst_14 = arith.constant 0.000000e+00 : f32
      %33 = vector.broadcast %cst_14 : f32 to vector<16x128xf32>
      %34 = arith.select %32, %16, %33 : vector<16x128xi1>, vector<16x128xf32>
      %35 = vector.shape_cast %34 : vector<16x128xf32> to vector<2x8x128xf32>
      %cst_15 = arith.constant dense<0.000000e+00> : vector<8x128xf32>
      %36 = vector.multi_reduction <add>, %35, %cst_15 [0] : vector<2x8x128xf32> to vector<8x128xf32>
      %37 = arith.addf %30, %36 : vector<8x128xf32>
      %c0_16 = arith.constant 0 : index
      %c0_17 = arith.constant 0 : index
      %38 = vector.load %arg5[%c0_16, %c0_17] : memref<8x128xf32, #tpu.memory_space<vmem>>, vector<8x128xf32>
      tpu.vector_store %arg5[%c0_16, %c0_17], %37 {strides = array<i32>} : memref<8x128xf32, #tpu.memory_space<vmem>>, vector<8x128xf32>,
    } else {
    }
    %c0_i32_9 = arith.constant 0 : i32
    %23 = arith.cmpi eq, %arg1, %c0_i32_9 : i32
    %24 = arith.extui %23 : i1 to i32
    %c0_i32_10 = arith.constant 0 : i32
    %25 = arith.cmpi ne, %24, %c0_i32_10 : i32
    scf.if %25 {
      %c0_11 = arith.constant 0 : index
      %c0_12 = arith.constant 0 : index
      %26 = vector.load %arg5[%c0_11, %c0_12] : memref<8x128xf32, #tpu.memory_space<vmem>>, vector<8x128xf32>
      %27 = vector.shape_cast %26 : vector<8x128xf32> to vector<1x8x128xf32>
      %c0_13 = arith.constant 0 : index
      %c0_14 = arith.constant 0 : index
      %c0_15 = arith.constant 0 : index
      %28 = vector.load %arg4[%c0_13, %c0_14, %c0_15] : memref<1x8x128xf32, #tpu.memory_space<vmem>>, vector<1x8x128xf32>
      tpu.vector_store %arg4[%c0_13, %c0_14, %c0_15], %27 {strides = array<i32>} : memref<1x8x128xf32, #tpu.memory_space<vmem>>, vector<1x8x128xf32>,
    } else {
    }
    return
  }
  func.func @transform_0(%arg0: i32, %arg1: i32) -> (i32, i32) {
    %c1_i32 = arith.constant 1 : i32
    %0 = arith.muli %arg0, %c1_i32 : i32
    %1 = arith.addi %0, %arg1 : i32
    %c0_i32 = arith.constant 0 : i32
    %2 = arith.minsi %1, %c0_i32 : i32
    %c0_i32_0 = arith.constant 0 : i32
    %c0_i32_1 = arith.constant 0 : i32
    return %2, %c0_i32_0 : i32, i32
  }
  func.func @transform_1(%arg0: i32, %arg1: i32) -> (i32, i32) {
    %c1_i32 = arith.constant 1 : i32
    %0 = arith.muli %arg0, %c1_i32 : i32
    %1 = arith.addi %0, %arg1 : i32
    %c0_i32 = arith.constant 0 : i32
    %2 = arith.minsi %1, %c0_i32 : i32
    %c0_i32_0 = arith.constant 0 : i32
    %c0_i32_1 = arith.constant 0 : i32
    return %2, %c0_i32_0 : i32, i32
  }
  func.func @transform_2(%arg0: i32, %arg1: i32) -> (i32, i32, i32) {
    %c0_i32 = arith.constant 0 : i32
    %c0_i32_0 = arith.constant 0 : i32
    %c0_i32_1 = arith.constant 0 : i32
    return %arg0, %c0_i32, %c0_i32_0 : i32, i32, i32
  }
}

</mosaic_0001>

<bundles_post_ra>
// kernel: tpu_custom_call.1
= control target key start
LH: loop header
LB: loop body
LE: loop exit
PB: predicated region body
PF: predicated region fallthrough
CT: control target
= control target key end

     0   :  { %7 = vsyncpa [#allocation4], 0  ;;  %s957_s0 = inlined_call_operand.hbm [shape: f32[16,128], index: 0, kind: input, shape index: {}]   ;;  %s958_s1 = inlined_call_operand.hbm [shape: f32[16,128], index: 1, kind: input, shape index: {}]   ;;  %s959_s2 = inlined_call_operand.hbm [shape: f32[2,8,128], index: 2, kind: output, shape index: {}]  }
   0x1   :  { %9 = vsyncpa [#allocation4 + $0x1], 0 }
   0x2   :  { %10 = vsyncpa [#allocation7], 0 }
   0x3   :  { %12 = vsyncpa [#allocation7 + $0x1], 0 }
   0x4   :  { %13 = vsyncpa [#allocation5], 0 }
   0x5   :  { %15 = vsyncpa [#allocation5 + $0x1], 0  ;;  %s746_s9 = smov 0   ;;  %s748_s10 = smov 0  }
   0x6   :  { %s750_s11 = smov 0   ;;  %s752_s12 = smov 0  }
   0x7   :  { %s754_s13 = smov 0   ;;  %s756_s14 = smov 0  }
   0x8   :  { %s758_s15 = smov 0   ;;  %s760_s16 = smov 0  }
   0x9 LB: > { %s431_s17 = sadd.s32 4294967295, %s723_s16   ;;  %s432_s18 = sadd.s32 4294967294, %s723_s16   ;;  %s723_s16 = sphi %s760_s16, %s21_s16   ;;  %s719_s15 = sphi %s758_s15, %s978_s15   ;;  %s715_s14 = sphi %s756_s14, %s977_s14   ;;  %s711_s13 = sphi %s754_s13, %s947_s13   ;;  %s707_s12 = sphi %s752_s12, %s976_s12   ;;  %s703_s11 = sphi %s750_s11, %s975_s11   ;;  %s699_s10 = sphi %s748_s10, %s974_s10   ;;  %s695_s9 = sphi %s746_s9, %s973_s9  }
   0xa   : > { %s33_s19 = sadd.s32 1, %s719_s15  ;;  %p692_p1 = scmp.ne.s32.totalorder %s711_s13, 0 }
   0xb   : > { %p35_p0 = scmp.ge.s32.totalorder %s33_s19, 2  ;;  %p54_p2 = scmp.eq.s32.totalorder %s723_s16, 0 }
   0xc   : > { %p59_p3 = scmp.ne.s32.totalorder %s711_s13, %s707_s12  ;;  %p60_p5 = scmp.eq.s32.totalorder %s431_s17, 0 }
   0xd   : > { %s980_s19 = smov (%p35_p0, %s33_s19), 0  ;;  %p792_p4 = por %p692_p1, %p54_p2 }
   0xe   : > { %p796_p6 = por %p60_p5, %p59_p3  ;;  %s101_s22 = ssub.s32 %s719_s15, %s980_s19 }
   0xf   : > { %p102_p7 = scmp.eq.s32.totalorder %s101_s22, 0  ;;  %s104_s23 = sadd.s32 1, %s703_s11 }
  0x10   : > { %s963_s21 = scalar_select %p796_p6, 1, 0 }
  0x11   : > { %s804_s24 = scalar_select %p102_p7, %s703_s11, %s104_s23  }
  0x12   : > { %p114_p8 = scmp.ne.s32.totalorder %s703_s11, %s699_s10  ;;  %p115_p9 = scmp.eq.s32.totalorder %s431_s17, 1 }
  0x13   : > { %p120_p10 = scmp.ne.s32.totalorder %s699_s10, %s695_s9  ;;  %p121_p11 = scmp.eq.s32.totalorder %s432_s18, 1 }
  0x14   : > { %p810_p12 = por %p115_p9, %p114_p8  ;;  %p471_p1 = scmp.lt.s32.totalorder %s723_s16, 2 }
  0x15   : > { %p815_p0 = por %p121_p11, %p120_p10  ;;  %s725_s27 = smov [#allocation3]  }
  0x16   : > { %s964_s25 = scalar_select %p810_p12, 1, 0 }
  0x17   : > { %s965_s26 = scalar_select %p815_p0, 1, 0 }
  0x18   : > { %s155_s28 = sshll.u32 %s725_s27, 4  ;;  %p822_p2 = pnand %p471_p1, %p792_p4  ;;  %s156_s28 = int_to_ptr.vmem [resolvable:$true] %s155_s28 }
  0x19   : > { %s556_s4 = scalar_lea.hbm %s957_s0, 256 }
  0x1a   : > { %p557_p3 = scmp.ne.s32.totalorder %s957_s0, %s556_s4  ;;  %p558_p5 = pneg %p822_p2 }
  0x1b   : > { %p563_p8 = scmp.lt.u32.totalorder %s556_s4, %s556_s4  ;;  %p565_p9 = scmp.lt.u32.totalorder %s556_s4, %s957_s0 }
  0x1c   : > { %p559_p7 = pnand %p558_p5, %p557_p3 }
  0x1d   : > { %p566_p10 = por %p565_p9, %p563_p8 }
  0x1e   : > { %p560_p4 = pneg %p559_p7 }
  0x20   : > { %p567_p11 = pnand %p566_p10, %p560_p4 }
  0x22   : > { %570 = shalt.err (!%p567_p11)
}
  0x23   : > { %s571_s12 = scalar_lea.vmem %s156_s28, 256  ;;  %s578_s17 = scalar_lea.vmem %s156_s28, 512 }
  0x24   : > { %p572_p1 = scmp.ne.s32.totalorder %s156_s28, %s571_s12  ;;  %p579_p12 = scmp.lt.s32.totalorder %s156_s28, %s156_s28 }
  0x25   : > { %p580_p6 = scmp.lt.s32.totalorder %s578_s17, %s571_s12 }
  0x26   : > { %p574_p13 = pnand %p572_p1, %p558_p5 }
  0x27   : > { %p581_p3 = por %p580_p6, %p579_p12 }
  0x28   : > { %p575_p0 = pneg %p574_p13 }
  0x2a   : > { %p582_p7 = pnand %p581_p3, %p575_p0 }
  0x2c   : > { %585 = shalt.err (!%p582_p7)
}
  0x2d   : > { %s726_s18 = smov 128   ;;  %s727_s20 = smov 8  }
  0x2e   : > { %463 = dma.hbm_to_vmem [thread:$0]  (!%p822_p2), %s957_s0, 256, %s156_s28, [#allocation4], %s726_s18, %s726_s18, %s727_s20  }
  0x2f   : > { %p441_p13 = scmp.ge.s32.totalorder %s723_s16, 1  ;;  %p187_p4 = scmp.lt.s32.totalorder %s723_s16, 3 }
  0x30   : > { %s728_s30 = smov [#allocation6]   ;;  %s586_s6 = scalar_lea.hbm %s958_s1, 256 }
  0x31   : > { %p853_p8 = pnand %p441_p13, %p187_p4  ;;  %s179_s3 = sshll.u32 %s728_s30, 4  ;;  %s180_s3 = int_to_ptr.vmem [resolvable:$true] %s179_s3 }
  0x32   : > { %p587_p6 = scmp.ne.s32.totalorder %s958_s1, %s586_s6  ;;  %p593_p9 = scmp.lt.u32.totalorder %s586_s6, %s586_s6 }
  0x33   : > { %s967_s27 = scalar_select %p853_p8, 1, 0 }
  0x34   : > { %p589_p12 = pnand %p587_p6, %p558_p5  ;;  %p595_p10 = scmp.lt.u32.totalorder %s586_s6, %s958_s1 }
  0x36   : > { %p590_p0 = pneg %p589_p12  ;;  %p596_p11 = por %p595_p10, %p593_p9 }
  0x38   : > { %p597_p1 = pnand %p596_p11, %p590_p0 }
  0x3a   : > { %600 = shalt.err (!%p597_p1)
}
  0x3b   : > { %s601_s17 = scalar_lea.vmem %s180_s3, 256  ;;  %s608_s22 = scalar_lea.vmem %s180_s3, 512 }
  0x3c   : > { %p602_p3 = scmp.ne.s32.totalorder %s180_s3, %s601_s17  ;;  %p609_p4 = scmp.lt.s32.totalorder %s180_s3, %s180_s3 }
  0x3d   : > { %p610_p8 = scmp.lt.s32.totalorder %s608_s22, %s601_s17 }
  0x3e   : > { %p604_p7 = pnand %p602_p3, %p558_p5 }
  0x3f   : > { %p611_p6 = por %p610_p8, %p609_p4 }
  0x40   : > { %p605_p13 = pneg %p604_p7 }
  0x42   : > { %p612_p12 = pnand %p611_p6, %p605_p13 }
  0x44   : > { %615 = shalt.err (!%p612_p12)
}
  0x45   : > { %466 = dma.hbm_to_vmem [thread:$0]  (!%p822_p2), %s958_s1, 256, %s180_s3, [#allocation7], %s726_s18, %s726_s18, %s727_s20  }
  0x46   : > { %p968_p0 = scmp.ne.s32.totalorder %s967_s27, 0 }
  0x47   : > { %s193_s4 = sand.u32 (!%p968_p0), 1, %s711_s13   ;;  %p969_p5 = scmp.ne.s32.totalorder (!%p968_p0), %s963_s21, 0 }
  0x48   : > { %191 = sbr.rel (%p968_p0) target bundleno = 165 (0xa5), region = 28  ;;  %s442_s5 = sshll.u32 (!%p968_p0), %s193_s4, 4 }
  0x49   : > { %s194_s6 = scalar_lea.sflag (!%p968_p0), [#allocation4], %s193_s4  ;;  %s197_s7 = scalar_lea.vmem (!%p968_p0), [#allocation3], %s442_s5 }
  0x4f   : > { %681 = dma.done.wait (%p969_p5), %s194_s6, 256  }
  0x50   : > { %683 = vsyncadd (%p969_p5), %s194_s6, 4294967040  ;;  %s203_s29 = scalar_lea.sflag [#allocation7], %s193_s4  ;;  %s206_s8 = scalar_lea.vmem [#allocation6], %s442_s5 }
  0x51   : > { %685 = dma.done.wait (%p969_p5), %s203_s29, 256  }
  0x52   : > { %687 = vsyncadd (%p969_p5), %s203_s29, 4294967040  ;;  %s229_s18 = sand.u32 1, %s699_s10   ;;  %v729_v0 = vmov 0.0   ;;  %v246_v1 = vld [vmem:[%s197_s7] sm:$0xff]  ;;  %v247_v2 = vld [vmem:[%s197_s7 + $0x8] sm:$0xff]  ;;  %p445_p2 = scmp.ge.s32.totalorder %s715_s14, 1 }
  0x53   : > { %s894_s20 = sshll.u32 %s229_s18, 3  ;;  %245 = vst [vmem:[#allocation2] sm:$0xff] %v729_v0  ;;  %v256_v3 = vand.u32 2147483647, %v246_v1  ;;  %v257_v4 = vand.u32 2147483647, %v247_v2 }
  0x54   : > { %v248_v15 = vld [vmem:[%s206_s8] sm:$0xff]  ;;  %v249_v16 = vld [vmem:[%s206_s8 + $0x8] sm:$0xff]  ;;  %v250_v18 = vmax.f32 %v246_v1, 0.0  ;;  %v251_v22 = vmax.f32 %v247_v2, 0.0  ;;  %s231_s21 = scalar_lea.vmem [#allocation8], %s894_s20 }
  0x55   : > { %v258_v5 = vsub.f32 0.0, %v256_v3  ;;  %v259_v6 = vsub.f32 0.0, %v257_v4  ;;  %v252_v19 = vmul.f32 %v248_v15, %v246_v1  ;;  %v253_v23 = vmul.f32 %v249_v16, %v247_v2 }
  0x57   : > { %v260_v7 = vmul.f32 1.442695, %v258_v5  ;;  %v262_v8 = vmul.f32 1.442695, %v259_v6  ;;  %v254_v27 = vsub.f32 %v250_v18, %v252_v19  ;;  %v255_v30 = vsub.f32 %v251_v22, %v253_v23 }
  0x59   : > { %548 = vpow2.f32 %v260_v7 }
  0x5a   : > { %550 = vpow2.f32 %v262_v8  ;;  %v288_v37 = vld [vmem:[#allocation2] sm:$0xff] (!%p445_p2) }
  0x63   : > { %v549_v9 = vpop.eup %548 }
  0x64   : > { %v551_v10 = vpop.eup %550  ;;  %v264_v11 = vadd.f32 1.0, %v549_v9  ;;  %v267_v13 = vmul.f32 -0.5, %v549_v9  ;;  %v270_v20 = vand.u32 2147483647, %v549_v9 }
  0x65   : > { %v273_v12 = vadd.f32 1.0, %v551_v10  ;;  %v276_v14 = vmul.f32 -0.5, %v551_v10  ;;  %v279_v24 = vand.u32 2147483647, %v551_v10 }
  0x66   : > { %552 = vlog2.f32 %v264_v11  ;;  %v268_v17 = vadd.f32 1.0, %v267_v13  ;;  %vm271_vm0 = vcmp.lt.f32.partialorder %v270_v20, 0.0004427343 }
  0x67   : > { %554 = vlog2.f32 %v273_v12  ;;  %v277_v21 = vadd.f32 1.0, %v276_v14  ;;  %vm280_vm1 = vcmp.lt.f32.partialorder %v279_v24, 0.0004427343 }
  0x68   : > { %v269_v25 = vmul.f32 %v549_v9, %v268_v17 }
  0x69   : > { %v278_v28 = vmul.f32 %v551_v10, %v277_v21 }
  0x6f   : > { %287 = sbr.rel (%p445_p2) target bundleno = 124 (0x7c), region = 44 }
  0x70   : > { %v553_v26 = vpop.eup %552 }
  0x71   : > { %v555_v29 = vpop.eup %554  ;;  %v266_v31 = vmul.f32 0.6931472, %v553_v26 }
  0x72   : > { %v275_v32 = vmul.f32 0.6931472, %v555_v29 }
  0x73   : > { %v272_v33 = vsel %vm271_vm0, %v269_v25, %v266_v31 }
  0x74   : > { %v281_v34 = vsel %vm280_vm1, %v278_v28, %v275_v32  ;;  %v282_v35 = vadd.f32 %v272_v33, %v254_v27 }
  0x75   : > { %v283_v36 = vadd.f32 %v281_v34, %v255_v30 }
  0x77   : > { %v289_v38 = vadd.f32 %v283_v36, %v282_v35 }
  0x79   : > { %v290_v39 = vadd.f32 %v289_v38, %v288_v37 }
  0x7b   : > { %291 = vst [vmem:[#allocation2] sm:$0xff] %v290_v39 }
  0x7c PF: > { %p446_p8 = scmp.lt.s32.totalorder %s715_s14, 1 }
  0x7d   : > { %v296_v40 = vlaneseq (!%p446_p8)  ;;  %s447_s27 = sshll.u32 (!%p446_p8), %s715_s14, 4 }
  0x7e   : > { %295 = sbr.rel (%p446_p8) target bundleno = 140 (0x8c), region = 48  ;;  %v300_v41 = vstv (!%p446_p8), %s447_s27 }
  0x7f   : > { %v297_v42 = vshrl.u32 (!%p446_p8), %v296_v40, 7 }
  0x81   : > { %v298_v43 = vadd.s32 (!%p446_p8), 8, %v297_v42  ;;  %v301_v44 = vadd.s32 (!%p446_p8), %v300_v41, %v297_v42 }
  0x82   : > { %v303_v47 = vld [vmem:[#allocation2] sm:$0xff] (!%p446_p8) }
  0x83   : > { %v302_v45 = vadd.s32 (!%p446_p8), %v300_v41, %v298_v43  ;;  %vm304_vm2 = vcmp.lt.s32.totalorder (!%p446_p8), %v301_v44, 16 }
  0x84   : > { %v306_v46 = vsel (!%p446_p8), %vm304_vm2, %v282_v35, 0.0 }
  0x85   : > { %vm305_vm3 = vcmp.lt.s32.totalorder %v302_v45, 16 }
  0x86   : > { %v307_v48 = vsel %vm305_vm3, %v283_v36, 0.0 }
  0x87   : > { %v308_v49 = vadd.f32 %v307_v48, %v306_v46 }
  0x89   : > { %v309_v50 = vadd.f32 %v308_v49, %v303_v47 }
  0x8b   : > { %310 = vst [vmem:[#allocation2] sm:$0xff] %v309_v50 }
  0x8c PF: > { %s449_s3 = sshll.u32 %s715_s14, 7  ;;  %s330_s22 = sshll.u32 %s231_s21, 4  ;;  %s331_s22 = int_to_ptr.vmem [resolvable:$true] %s330_s22 }
  0x8d   : > { %s906_s17 = scalar_lea.hbm %s959_s2, %s449_s3  ;;  %s317_s23 = scalar_lea.sflag [#allocation5], %s229_s18 }
  0x8e   : > { %s616_s30 = scalar_lea.vmem %s331_s22, 128  ;;  %p970_p10 = scmp.ne.s32.totalorder %s964_s25, 0 }
  0x8f   : > { %p617_p9 = scmp.ne.s32.totalorder %s331_s22, %s616_s30  ;;  %s730_s4 = smov [#allocation8]  }
  0x90   : > { %s620_s5 = sshll.u32 %s730_s4, 4  ;;  %s621_s5 = int_to_ptr.vmem [resolvable:$false] %s620_s5 }
  0x91   : > { %p618_p11 = pnand %p617_p9, %p970_p10  ;;  %s622_s14 = scalar_lea.vmem %s621_s5, 256 }
  0x92   : > { %v314_v51 = vld [vmem:[#allocation2] sm:$0xff]  ;;  %p623_p3 = scmp.lt.s32.totalorder %s331_s22, %s621_s5  ;;  %p624_p7 = scmp.lt.s32.totalorder %s622_s14, %s616_s30 }
  0x93   : > { %315 = vst [vmem:[%s231_s21] sm:$0xff] %v314_v51  ;;  %p619_p1 = pneg %p618_p11 }
  0x94   : > { %p625_p13 = por %p624_p7, %p623_p3 }
  0x96   : > { %p626_p4 = pnand %p625_p13, %p619_p1 }
  0x98   : > { %629 = shalt.err (!%p626_p4)
}
  0x99   : > { %s630_s6 = scalar_lea.hbm %s906_s17, 128  ;;  %s634_s8 = scalar_lea.hbm %s959_s2, 256 }
  0x9a   : > { %p631_p6 = scmp.ne.s32.totalorder %s906_s17, %s630_s6  ;;  %p635_p5 = scmp.lt.u32.totalorder %s906_s17, %s959_s2 }
  0x9b   : > { %p636_p2 = scmp.lt.u32.totalorder %s634_s8, %s630_s6  ;;  %p638_p9 = scmp.lt.u32.totalorder %s630_s6, %s906_s17 }
  0x9c   : > { %p632_p12 = pnand %p631_p6, %p970_p10 }
  0x9d   : > { %p637_p8 = por %p636_p2, %p635_p5 }
  0x9e   : > { %p633_p0 = pneg %p632_p12 }
  0x9f   : > { %p639_p11 = por %p638_p9, %p637_p8 }
  0xa1   : > { %p640_p1 = pnand %p639_p11, %p633_p0 }
  0xa3   : > { %643 = shalt.err (!%p640_p1)
}
  0xa4   : > { %458 = dma.vmem_to_hbm [thread:$0]  (%p970_p10), %s331_s22, 128, %s906_s17, %s317_s23  }
  0xa5 PF: > { %s342_s21 = sand.u32 1, %s695_s9   ;;  %p971_p3 = scmp.ne.s32.totalorder %s965_s26, 0 }
  0xa6   : > { %p972_p7 = scmp.ge.s32.totalorder %s723_s16, 2  ;;  %s343_s27 = scalar_lea.sflag [#allocation5], %s342_s21 }
  0xa8   : > { %p468_p13 = pnand %p972_p7, %p971_p3 }
  0xaa   : > { %689 = dma.done.wait (!%p468_p13), %s343_s27, 128  }
  0xab   : > { %691 = vsyncadd (!%p468_p13), %s343_s27, 4294967168  ;;  %s21_s16 = sadd.s32 1, %s723_s16   ;;  %s973_s9 = smov %s699_s10 }
  0xac   : > { %p18_p4 = scmp.ge.s32.totalorder %s21_s16, 4   ;;  %s974_s10 = smov %s703_s11 }
  0xad   : > { %s975_s11 = smov %s804_s24  ;;  %s976_s12 = smov %s711_s13 }
  0xae   : > { %s947_s13 = smov 0   ;;  %s977_s14 = smov %s719_s15 }
  0xaf   : > { %s978_s15 = smov %s980_s19  ;;  %20 = sbr.rel (!%p18_p4) target bundleno = 9 (0x9), region = 102 }
  0xb6   :  { %348 = vsyncpa [#allocation4], 1 }
  0xb7   :  { %350 = vsyncpa [#allocation4 + $0x1], 1 }
  0xb8   :  { %351 = vsyncpa [#allocation7], 1 }
  0xb9   :  { %353 = vsyncpa [#allocation7 + $0x1], 1 }
  0xba   :  { %354 = vsyncpa [#allocation5], 1 }
  0xbb   :  { %356 = vsyncpa [#allocation5 + $0x1], 1 }

</bundles_post_ra>
